<compile_context>
chip_gen: v5e
topology: v5e:2x2
jax: 0.10.0
libtpu: 0.0.40
codegen_flags: <defaults>
</compile_context>

<pallas_src>
import functools
import math

import jax
import jax.numpy as jnp
from jax import lax
from jax.experimental import pallas as pl
from jax.experimental.pallas import tpu as pltpu


def _round_up(x, m):
    return ((x + m - 1) // m) * m


# ----------------------------------------------------------------------------
# Pallas kernel: `step` GNN-cell iterations for a tile of Bt sessions.
# ----------------------------------------------------------------------------
def _gnn_kernel(a_ref, h_ref, wpre_ref, bpre_ref, cb_ref, out_ref, pio_ref,
                *, step, hidden_size, bt, seq, cp, compute_dtype):
    H = hidden_size
    M = bt * seq

    # Hoisted loads / broadcasts (once per grid step, not once per GNN step).
    a = a_ref[...]                  # (bt, seq, 2*seq)  compute_dtype
    wpre = wpre_ref[...]            # (H, 3*cp)         compute_dtype
    bpre = bpre_ref[...]            # (1, 3*cp)         f32
    cb = cb_ref[...]                # (1, cp)           f32

    h = h_ref[...].astype(jnp.float32).reshape(M, H)    # carried state, f32

    def one_step(h):
        # Fused per-node projection: [A_in gate path | A_out gate path | gh].
        pre = jnp.dot(h.astype(compute_dtype), wpre,
                      preferred_element_type=jnp.float32) + bpre      # (M, 3cp)
        p_in = pre[:, 0:cp].reshape(bt, seq, cp)
        p_out = pre[:, cp:2 * cp].reshape(bt, seq, cp)
        gh = pre[:, 2 * cp:3 * cp]                                    # (M, cp)

        # Row-stack [P_in ; P_out] per session through a VMEM scratch so both
        # adjacency aggregations fuse into a single batched matmul:
        #   [A_in | A_out] @ [P_in ; P_out] = A_in @ P_in + A_out @ P_out
        pio_ref[:, 0:seq, :] = p_in.astype(compute_dtype)
        pio_ref[:, seq:2 * seq, :] = p_out.astype(compute_dtype)
        agg = jnp.einsum("bij,bjh->bih", a, pio_ref[...],
                         preferred_element_type=jnp.float32)          # (bt, seq, cp)
        gi = agg.reshape(M, cp) + cb

        # GRU-style gating, kept in f32 (matches the PyTorch GNNCell).
        r = jax.nn.sigmoid(gi[:, 0:H] + gh[:, 0:H])
        u = jax.nn.sigmoid(gi[:, H:2 * H] + gh[:, H:2 * H])
        c = jnp.tanh(gi[:, 2 * H:3 * H] + r * gh[:, 2 * H:3 * H])
        return (h - c) * u + c

    if step <= 4:
        for _ in range(step):          # short static unroll
            h = one_step(h)
    else:
        h = lax.fori_loop(0, step, lambda _, hh: one_step(hh), h, unroll=2)

    out_ref[...] = h.reshape(bt, seq, H).astype(out_ref.dtype)


# ----------------------------------------------------------------------------
# Wrapper: embedding lookup + weight/bias folding + pallas_call over batch tiles.
# ----------------------------------------------------------------------------
def session_graph_forward(inputs, A, params, *, step, batch_tile=32,
                          compute_dtype=jnp.bfloat16):
    """SessionGraph.forward.

    batch_tile: sessions per grid step (M = batch_tile*S MXU rows). For v7x keep
      batch_tile <= B/2 (two TensorCores) and mind its smaller 64 MiB VMEM.
    compute_dtype: bf16 is the fast path on v6e/v7x; float32 for bit-exactness
      (v5e elementwise math is always f32 either way).
    """
    f32 = jnp.float32
    emb = params["embedding"]
    hidden0 = jnp.take(emb, inputs, axis=0).astype(f32)     # (B, S, H)
    B, S, H = hidden0.shape

    # ---- fold edge linears, gate input weights and all biases (glue) ----
    Wa = params["w_ih"][:, :H].T.astype(f32)                # (H, 3H)
    Wb = params["w_ih"][:, H:].T.astype(f32)                # (H, 3H)
    w_in_gate = params["w_edge_in"].T @ Wa                  # (H, 3H)
    w_out_gate = params["w_edge_out"].T @ Wb                # (H, 3H)
    whh_t = params["w_hh"].T.astype(f32)                    # (H, 3H)
    c_in = params["b_edge_in"] @ Wa                         # (3H,)
    c_out = params["b_edge_out"] @ Wb                       # (3H,)
    cb = params["b_iah"] @ Wa + params["b_oah"] @ Wb + params["b_ih"]   # (3H,)

    CP = _round_up(3 * H, 128)        # lane-pad each gate chunk to vreg width

    def pad_cols(x):
        return jnp.pad(x, [(0, 0)] * (x.ndim - 1) + [(0, CP - 3 * H)])

    w_pre = jnp.concatenate(
        [pad_cols(w_in_gate), pad_cols(w_out_gate), pad_cols(whh_t)],
        axis=1).astype(compute_dtype)                                  # (H, 3CP)
    b_pre = jnp.concatenate(
        [pad_cols(c_in[None, :]), pad_cols(c_out[None, :]),
         pad_cols(params["b_hh"][None, :])], axis=1).astype(f32)       # (1, 3CP)
    cb = pad_cols(cb[None, :]).astype(f32)                             # (1, CP)

    # ---- pad S to a sublane multiple and B to a multiple of the batch tile ----
    Sp = _round_up(S, 8)
    A_in, A_out = A[:, :, :S], A[:, :, S:2 * S]
    if Sp != S:
        ps = [(0, 0), (0, Sp - S), (0, Sp - S)]
        A_in, A_out = jnp.pad(A_in, ps), jnp.pad(A_out, ps)
        hidden0 = jnp.pad(hidden0, [(0, 0), (0, Sp - S), (0, 0)])
    A_cat = jnp.concatenate([A_in, A_out], axis=2).astype(compute_dtype)

    Bt = max(1, min(batch_tile, B))
    Bp = _round_up(B, Bt)
    if Bp != B:
        A_cat = jnp.pad(A_cat, [(0, Bp - B), (0, 0), (0, 0)])
        hidden0 = jnp.pad(hidden0, [(0, Bp - B), (0, 0), (0, 0)])

    kernel = functools.partial(
        _gnn_kernel, step=step, hidden_size=H, bt=Bt, seq=Sp, cp=CP,
        compute_dtype=compute_dtype)

    out = pl.pallas_call(
        kernel,
        out_shape=jax.ShapeDtypeStruct((Bp, Sp, H), jnp.float32),
        grid=(Bp // Bt,),
        in_specs=[
            pl.BlockSpec((Bt, Sp, 2 * Sp), lambda b: (b, 0, 0)),   # A_cat
            pl.BlockSpec((Bt, Sp, H), lambda b: (b, 0, 0)),        # hidden0
            pl.BlockSpec((H, 3 * CP), lambda b: (0, 0)),           # fused weights
            pl.BlockSpec((1, 3 * CP), lambda b: (0, 0)),           # fused pre-bias
            pl.BlockSpec((1, CP), lambda b: (0, 0)),               # fused gi bias
        ],
        out_specs=pl.BlockSpec((Bt, Sp, H), lambda b: (b, 0, 0)),
        scratch_shapes=[pltpu.VMEM((Bt, 2 * Sp, CP), compute_dtype)],
        compiler_params=pltpu.CompilerParams(
            dimension_semantics=("parallel",)),
    )(A_cat, hidden0, w_pre, b_pre, cb)

    return out[:B, :S, :]


# ----------------------------------------------------------------------------
# Pure-JAX reference (mirrors the PyTorch GNNCell exactly) for verification.
# ----------------------------------------------------------------------------
def ref_forward(inputs, A, params, *, step):
    h = jnp.take(params["embedding"], inputs, axis=0)
    S = A.shape[1]
    for _ in range(step):
        ei = h @ params["w_edge_in"].T + params["b_edge_in"]
        eo = h @ params["w_edge_out"].T + params["b_edge_out"]
        input_in = jnp.einsum("bij,bjh->bih", A[:, :, :S], ei) + params["b_iah"]
        input_out = jnp.einsum("bij,bjh->bih", A[:, :, S:2 * S], eo) + params["b_oah"]
        inp = jnp.concatenate([input_in, input_out], axis=2)
        gi = inp @ params["w_ih"].T + params["b_ih"]
        gh = h @ params["w_hh"].T + params["b_hh"]
        H = h.shape[-1]
        i_r, i_u, i_c = gi[..., :H], gi[..., H:2 * H], gi[..., 2 * H:]
        h_r, h_u, h_c = gh[..., :H], gh[..., H:2 * H], gh[..., 2 * H:]
        u = jax.nn.sigmoid(i_u + h_u)
        r = jax.nn.sigmoid(i_r + h_r)
        c = jnp.tanh(i_c + r * h_c)
        h = (h - c) * u + c
    return h


# ----------------------------------------------------------------------------
# Deterministic parameter init (mirrors reset_parameters: U(-stdv, stdv)).
# ----------------------------------------------------------------------------
def init_params(key, n_node, hidden_size):
    stdv = 1.0 / math.sqrt(hidden_size)
    H = hidden_size
    names_shapes = [
        ("embedding", (n_node, H)),
        ("w_edge_in", (H, H)), ("b_edge_in", (H,)),
        ("w_edge_out", (H, H)), ("b_edge_out", (H,)),
        ("w_ih", (3 * H, 2 * H)), ("b_ih", (3 * H,)),
        ("w_hh", (3 * H, H)), ("b_hh", (3 * H,)),
        ("b_iah", (H,)), ("b_oah", (H,)),
    ]
    params = {}
    keys = jax.random.split(key, len(names_shapes))
    for k, (name, shape) in zip(keys, names_shapes):
        params[name] = jax.random.uniform(
            k, shape, dtype=jnp.float32, minval=-stdv, maxval=stdv)
    return params
    # TODO(synk): compute_scores() (attention readout + item scoring) is a
    # separate method not invoked by forward(); not implemented here.


if __name__ == "__main__":
    B, S, H = 8, 8, 32
    n_node = 50
    step = 2

    key = jax.random.PRNGKey(0)
    k_par, k_inp, k_adj = jax.random.split(key, 3)

    params = init_params(k_par, n_node, H)
    inputs = jax.random.randint(k_inp, (B, S), 0, n_node, dtype=jnp.int32)
    A = jax.random.uniform(k_adj, (B, S, 2 * S), dtype=jnp.float32)

    ref = ref_forward(inputs, A, params, step=step)

    # f32 path: strict correctness check vs. the reference.
    out_f32 = session_graph_forward(inputs, A, params, step=step,
                                    batch_tile=4, compute_dtype=jnp.float32)
    out_f32 = jax.block_until_ready(out_f32)
    assert out_f32.shape == (B, S, H)
    assert jnp.allclose(out_f32, ref, atol=1e-4, rtol=1e-4), "f32 mismatch vs reference"

    # bf16 matmul path (v6e/v7x fast path): sanity check with loose tolerance.
    out_bf16 = session_graph_forward(inputs, A, params, step=step,
                                     batch_tile=4, compute_dtype=jnp.bfloat16)
    out_bf16 = jax.block_until_ready(out_bf16)
    assert out_bf16.shape == (B, S, H)
    assert jnp.allclose(out_bf16, ref, atol=1e-1, rtol=1e-1), "bf16 mismatch vs reference"

    print("KERNEL_OK")
</pallas_src>

<mosaic_0001>
module attributes {stable_mosaic.version = 11 : i64} {
  func.func @_gnn_kernel(%arg0: i32, %arg1: memref<4x8x16xf32, #tpu.memory_space<vmem>>, %arg2: memref<4x8x32xf32, #tpu.memory_space<vmem>>, %arg3: memref<32x384xf32, #tpu.memory_space<vmem>>, %arg4: memref<1x384xf32, #tpu.memory_space<vmem>>, %arg5: memref<1x128xf32, #tpu.memory_space<vmem>>, %arg6: memref<4x8x32xf32, #tpu.memory_space<vmem>>, %arg7: memref<4x16x128xf32, #tpu.memory_space<vmem>>) attributes {dimension_semantics = [#tpu.dimension_semantics<parallel>], iteration_bounds = array<i64: 2>, scalar_prefetch = 0 : i64, scratch_operands = 1 : i64, tpu.core_type = #tpu.core_type<tc>, window_params = [{transform_indices = @transform_0, window_bounds = array<i64: 4, 8, 16>}, {transform_indices = @transform_1, window_bounds = array<i64: 4, 8, 32>}, {pipeline_mode = #tpu.pipeline_mode<synchronous>, transform_indices = @transform_2, window_bounds = array<i64: 32, 384>}, {pipeline_mode = #tpu.pipeline_mode<synchronous>, transform_indices = @transform_3, window_bounds = array<i64: 1, 384>}, {pipeline_mode = #tpu.pipeline_mode<synchronous>, transform_indices = @transform_4, window_bounds = array<i64: 1, 128>}, {transform_indices = @transform_5, window_bounds = array<i64: 4, 8, 32>}]} {
    %c0 = arith.constant 0 : index
    %c0_0 = arith.constant 0 : index
    %c0_1 = arith.constant 0 : index
    %0 = vector.load %arg1[%c0, %c0_0, %c0_1] : memref<4x8x16xf32, #tpu.memory_space<vmem>>, vector<4x8x16xf32>
    %c0_2 = arith.constant 0 : index
    %c0_3 = arith.constant 0 : index
    %1 = vector.load %arg3[%c0_2, %c0_3] : memref<32x384xf32, #tpu.memory_space<vmem>>, vector<32x384xf32>
    %c0_4 = arith.constant 0 : index
    %c0_5 = arith.constant 0 : index
    %2 = vector.load %arg4[%c0_4, %c0_5] : memref<1x384xf32, #tpu.memory_space<vmem>>, vector<1x384xf32>
    %c0_6 = arith.constant 0 : index
    %c0_7 = arith.constant 0 : index
    %3 = vector.load %arg5[%c0_6, %c0_7] : memref<1x128xf32, #tpu.memory_space<vmem>>, vector<1x128xf32>
    %c0_8 = arith.constant 0 : index
    %c0_9 = arith.constant 0 : index
    %c0_10 = arith.constant 0 : index
    %4 = vector.load %arg2[%c0_8, %c0_9, %c0_10] : memref<4x8x32xf32, #tpu.memory_space<vmem>>, vector<4x8x32xf32>
    %5 = vector.shape_cast %4 : vector<4x8x32xf32> to vector<32x32xf32>
    %cst = arith.constant dense<0.000000e+00> : vector<32x384xf32>
    %6 = tpu.matmul %5, %1, %cst {dimension_numbers = #tpu.dot_dimension_numbers<[1], [0], [0], [1], [0, 0, 1, 1], [], []>} : vector<32x32xf32>, vector<32x384xf32>, vector<32x384xf32> -> vector<32x384xf32>
    %7 = vector.broadcast %2 : vector<1x384xf32> to vector<32x384xf32>
    %8 = arith.addf %6, %7 : vector<32x384xf32>
    %9 = vector.extract_strided_slice %8 {offsets = [0, 0], sizes = [32, 128], strides = [1, 1]} : vector<32x384xf32> to vector<32x128xf32>
    %10 = vector.shape_cast %9 : vector<32x128xf32> to vector<4x8x128xf32>
    %11 = vector.extract_strided_slice %8 {offsets = [0, 128], sizes = [32, 128], strides = [1, 1]} : vector<32x384xf32> to vector<32x128xf32>
    %12 = vector.shape_cast %11 : vector<32x128xf32> to vector<4x8x128xf32>
    %13 = vector.extract_strided_slice %8 {offsets = [0, 256], sizes = [32, 128], strides = [1, 1]} : vector<32x384xf32> to vector<32x128xf32>
    %c0_11 = arith.constant 0 : index
    %c0_12 = arith.constant 0 : index
    %c0_13 = arith.constant 0 : index
    %14 = vector.load %arg7[%c0_11, %c0_12, %c0_13] : memref<4x16x128xf32, #tpu.memory_space<vmem>>, vector<4x8x128xf32>
    tpu.vector_store %arg7[%c0_11, %c0_12, %c0_13], %10 {strides = array<i32>} : memref<4x16x128xf32, #tpu.memory_space<vmem>>, vector<4x8x128xf32>,
    %c0_14 = arith.constant 0 : index
    %c8 = arith.constant 8 : index
    %c0_15 = arith.constant 0 : index
    %15 = vector.load %arg7[%c0_14, %c8, %c0_15] : memref<4x16x128xf32, #tpu.memory_space<vmem>>, vector<4x8x128xf32>
    tpu.vector_store %arg7[%c0_14, %c8, %c0_15], %12 {strides = array<i32>} : memref<4x16x128xf32, #tpu.memory_space<vmem>>, vector<4x8x128xf32>,
    %c0_16 = arith.constant 0 : index
    %c0_17 = arith.constant 0 : index
    %c0_18 = arith.constant 0 : index
    %16 = vector.load %arg7[%c0_16, %c0_17, %c0_18] : memref<4x16x128xf32, #tpu.memory_space<vmem>>, vector<4x16x128xf32>
    "tpu.trace_start"() <{level = 10 : i32, message = "bij,bjh->bih"}> : () -> ()
    %cst_19 = arith.constant dense<0.000000e+00> : vector<4x8x128xf32>
    %17 = tpu.matmul %0, %16, %cst_19 {dimension_numbers = #tpu.dot_dimension_numbers<[2], [1], [1], [2], [0, 0, 0, 1, 1, 2], [0], [0]>} : vector<4x8x16xf32>, vector<4x16x128xf32>, vector<4x8x128xf32> -> vector<4x8x128xf32>
    "tpu.trace_stop"() : () -> ()
    %18 = vector.shape_cast %17 : vector<4x8x128xf32> to vector<32x128xf32>
    %19 = vector.broadcast %3 : vector<1x128xf32> to vector<32x128xf32>
    %20 = arith.addf %18, %19 : vector<32x128xf32>
    %21 = vector.extract_strided_slice %20 {offsets = [0, 0], sizes = [32, 32], strides = [1, 1]} : vector<32x128xf32> to vector<32x32xf32>
    %22 = vector.extract_strided_slice %13 {offsets = [0, 0], sizes = [32, 32], strides = [1, 1]} : vector<32x128xf32> to vector<32x32xf32>
    %23 = arith.addf %21, %22 : vector<32x32xf32>
    %24 = arith.negf %23 : vector<32x32xf32>
    %25 = math.exp %24 : vector<32x32xf32>
    %cst_20 = arith.constant 1.000000e+00 : f32
    %26 = vector.broadcast %cst_20 : f32 to vector<32x32xf32>
    %27 = arith.addf %26, %25 : vector<32x32xf32>
    %28 = arith.divf %26, %27 : vector<32x32xf32>
    %29 = vector.extract_strided_slice %20 {offsets = [0, 32], sizes = [32, 32], strides = [1, 1]} : vector<32x128xf32> to vector<32x32xf32>
    %30 = vector.extract_strided_slice %13 {offsets = [0, 32], sizes = [32, 32], strides = [1, 1]} : vector<32x128xf32> to vector<32x32xf32>
    %31 = arith.addf %29, %30 : vector<32x32xf32>
    %32 = arith.negf %31 : vector<32x32xf32>
    %33 = math.exp %32 : vector<32x32xf32>
    %cst_21 = arith.constant 1.000000e+00 : f32
    %34 = vector.broadcast %cst_21 : f32 to vector<32x32xf32>
    %35 = arith.addf %34, %33 : vector<32x32xf32>
    %36 = arith.divf %34, %35 : vector<32x32xf32>
    %37 = vector.extract_strided_slice %20 {offsets = [0, 64], sizes = [32, 32], strides = [1, 1]} : vector<32x128xf32> to vector<32x32xf32>
    %38 = vector.extract_strided_slice %13 {offsets = [0, 64], sizes = [32, 32], strides = [1, 1]} : vector<32x128xf32> to vector<32x32xf32>
    %39 = arith.mulf %28, %38 : vector<32x32xf32>
    %40 = arith.addf %37, %39 : vector<32x32xf32>
    %41 = math.tanh %40 : vector<32x32xf32>
    %42 = arith.subf %5, %41 : vector<32x32xf32>
    %43 = arith.mulf %42, %36 : vector<32x32xf32>
    %44 = arith.addf %43, %41 : vector<32x32xf32>
    %cst_22 = arith.constant dense<0.000000e+00> : vector<32x384xf32>
    %45 = tpu.matmul %44, %1, %cst_22 {dimension_numbers = #tpu.dot_dimension_numbers<[1], [0], [0], [1], [0, 0, 1, 1], [], []>} : vector<32x32xf32>, vector<32x384xf32>, vector<32x384xf32> -> vector<32x384xf32>
    %46 = vector.broadcast %2 : vector<1x384xf32> to vector<32x384xf32>
    %47 = arith.addf %45, %46 : vector<32x384xf32>
    %48 = vector.extract_strided_slice %47 {offsets = [0, 0], sizes = [32, 128], strides = [1, 1]} : vector<32x384xf32> to vector<32x128xf32>
    %49 = vector.shape_cast %48 : vector<32x128xf32> to vector<4x8x128xf32>
    %50 = vector.extract_strided_slice %47 {offsets = [0, 128], sizes = [32, 128], strides = [1, 1]} : vector<32x384xf32> to vector<32x128xf32>
    %51 = vector.shape_cast %50 : vector<32x128xf32> to vector<4x8x128xf32>
    %52 = vector.extract_strided_slice %47 {offsets = [0, 256], sizes = [32, 128], strides = [1, 1]} : vector<32x384xf32> to vector<32x128xf32>
    %c0_23 = arith.constant 0 : index
    %c0_24 = arith.constant 0 : index
    %c0_25 = arith.constant 0 : index
    %53 = vector.load %arg7[%c0_23, %c0_24, %c0_25] : memref<4x16x128xf32, #tpu.memory_space<vmem>>, vector<4x8x128xf32>
    tpu.vector_store %arg7[%c0_23, %c0_24, %c0_25], %49 {strides = array<i32>} : memref<4x16x128xf32, #tpu.memory_space<vmem>>, vector<4x8x128xf32>,
    %c0_26 = arith.constant 0 : index
    %c8_27 = arith.constant 8 : index
    %c0_28 = arith.constant 0 : index
    %54 = vector.load %arg7[%c0_26, %c8_27, %c0_28] : memref<4x16x128xf32, #tpu.memory_space<vmem>>, vector<4x8x128xf32>
    tpu.vector_store %arg7[%c0_26, %c8_27, %c0_28], %51 {strides = array<i32>} : memref<4x16x128xf32, #tpu.memory_space<vmem>>, vector<4x8x128xf32>,
    %c0_29 = arith.constant 0 : index
    %c0_30 = arith.constant 0 : index
    %c0_31 = arith.constant 0 : index
    %55 = vector.load %arg7[%c0_29, %c0_30, %c0_31] : memref<4x16x128xf32, #tpu.memory_space<vmem>>, vector<4x16x128xf32>
    "tpu.trace_start"() <{level = 10 : i32, message = "bij,bjh->bih"}> : () -> ()
    %cst_32 = arith.constant dense<0.000000e+00> : vector<4x8x128xf32>
    %56 = tpu.matmul %0, %55, %cst_32 {dimension_numbers = #tpu.dot_dimension_numbers<[2], [1], [1], [2], [0, 0, 0, 1, 1, 2], [0], [0]>} : vector<4x8x16xf32>, vector<4x16x128xf32>, vector<4x8x128xf32> -> vector<4x8x128xf32>
    "tpu.trace_stop"() : () -> ()
    %57 = vector.shape_cast %56 : vector<4x8x128xf32> to vector<32x128xf32>
    %58 = vector.broadcast %3 : vector<1x128xf32> to vector<32x128xf32>
    %59 = arith.addf %57, %58 : vector<32x128xf32>
    %60 = vector.extract_strided_slice %59 {offsets = [0, 0], sizes = [32, 32], strides = [1, 1]} : vector<32x128xf32> to vector<32x32xf32>
    %61 = vector.extract_strided_slice %52 {offsets = [0, 0], sizes = [32, 32], strides = [1, 1]} : vector<32x128xf32> to vector<32x32xf32>
    %62 = arith.addf %60, %61 : vector<32x32xf32>
    %63 = arith.negf %62 : vector<32x32xf32>
    %64 = math.exp %63 : vector<32x32xf32>
    %cst_33 = arith.constant 1.000000e+00 : f32
    %65 = vector.broadcast %cst_33 : f32 to vector<32x32xf32>
    %66 = arith.addf %65, %64 : vector<32x32xf32>
    %67 = arith.divf %65, %66 : vector<32x32xf32>
    %68 = vector.extract_strided_slice %59 {offsets = [0, 32], sizes = [32, 32], strides = [1, 1]} : vector<32x128xf32> to vector<32x32xf32>
    %69 = vector.extract_strided_slice %52 {offsets = [0, 32], sizes = [32, 32], strides = [1, 1]} : vector<32x128xf32> to vector<32x32xf32>
    %70 = arith.addf %68, %69 : vector<32x32xf32>
    %71 = arith.negf %70 : vector<32x32xf32>
    %72 = math.exp %71 : vector<32x32xf32>
    %cst_34 = arith.constant 1.000000e+00 : f32
    %73 = vector.broadcast %cst_34 : f32 to vector<32x32xf32>
    %74 = arith.addf %73, %72 : vector<32x32xf32>
    %75 = arith.divf %73, %74 : vector<32x32xf32>
    %76 = vector.extract_strided_slice %59 {offsets = [0, 64], sizes = [32, 32], strides = [1, 1]} : vector<32x128xf32> to vector<32x32xf32>
    %77 = vector.extract_strided_slice %52 {offsets = [0, 64], sizes = [32, 32], strides = [1, 1]} : vector<32x128xf32> to vector<32x32xf32>
    %78 = arith.mulf %67, %77 : vector<32x32xf32>
    %79 = arith.addf %76, %78 : vector<32x32xf32>
    %80 = math.tanh %79 : vector<32x32xf32>
    %81 = arith.subf %44, %80 : vector<32x32xf32>
    %82 = arith.mulf %81, %75 : vector<32x32xf32>
    %83 = arith.addf %82, %80 : vector<32x32xf32>
    %84 = vector.shape_cast %83 : vector<32x32xf32> to vector<4x8x32xf32>
    %c0_35 = arith.constant 0 : index
    %c0_36 = arith.constant 0 : index
    %c0_37 = arith.constant 0 : index
    %85 = vector.load %arg6[%c0_35, %c0_36, %c0_37] : memref<4x8x32xf32, #tpu.memory_space<vmem>>, vector<4x8x32xf32>
    tpu.vector_store %arg6[%c0_35, %c0_36, %c0_37], %84 {strides = array<i32>} : memref<4x8x32xf32, #tpu.memory_space<vmem>>, vector<4x8x32xf32>,
    return
  }
  func.func @transform_0(%arg0: i32) -> (i32, i32, i32) {
    %c0_i32 = arith.constant 0 : i32
    %c0_i32_0 = arith.constant 0 : i32
    %c0_i32_1 = arith.constant 0 : i32
    return %arg0, %c0_i32, %c0_i32_0 : i32, i32, i32
  }
  func.func @transform_1(%arg0: i32) -> (i32, i32, i32) {
    %c0_i32 = arith.constant 0 : i32
    %c0_i32_0 = arith.constant 0 : i32
    %c0_i32_1 = arith.constant 0 : i32
    return %arg0, %c0_i32, %c0_i32_0 : i32, i32, i32
  }
  func.func @transform_2(%arg0: i32) -> (i32, i32) {
    %c0_i32 = arith.constant 0 : i32
    %c0_i32_0 = arith.constant 0 : i32
    %c0_i32_1 = arith.constant 0 : i32
    return %c0_i32, %c0_i32_0 : i32, i32
  }
  func.func @transform_3(%arg0: i32) -> (i32, i32) {
    %c0_i32 = arith.constant 0 : i32
    %c0_i32_0 = arith.constant 0 : i32
    %c0_i32_1 = arith.constant 0 : i32
    return %c0_i32, %c0_i32_0 : i32, i32
  }
  func.func @transform_4(%arg0: i32) -> (i32, i32) {
    %c0_i32 = arith.constant 0 : i32
    %c0_i32_0 = arith.constant 0 : i32
    %c0_i32_1 = arith.constant 0 : i32
    return %c0_i32, %c0_i32_0 : i32, i32
  }
  func.func @transform_5(%arg0: i32) -> (i32, i32, i32) {
    %c0_i32 = arith.constant 0 : i32
    %c0_i32_0 = arith.constant 0 : i32
    %c0_i32_1 = arith.constant 0 : i32
    return %arg0, %c0_i32, %c0_i32_0 : i32, i32, i32
  }
}

</mosaic_0001>

<bundles_post_ra>
// kernel: tpu_custom_call.1
= control target key start
LH: loop header
LB: loop body
LE: loop exit
PB: predicated region body
PF: predicated region fallthrough
CT: control target
= control target key end

     0   :  { %s2098_s0 = inlined_call_operand.hbm [shape: f32[8,8,16], index: 0, kind: input, shape index: {}]   ;;  %s2099_s1 = inlined_call_operand.hbm [shape: f32[8,8,32], index: 1, kind: input, shape index: {}]   ;;  %s2100_s2 = inlined_call_operand.hbm [shape: f32[32,384], index: 2, kind: input, shape index: {}]   ;;  %s2101_s3 = inlined_call_operand.hbm [shape: f32[1,384], index: 3, kind: input, shape index: {}]   ;;  %s2102_s4 = inlined_call_operand.vmem [shape: f32[1,128], index: 4, kind: input, shape index: {}]   ;;  %s2103_s5 = inlined_call_operand.hbm [shape: f32[8,8,32], index: 5, kind: output, shape index: {}]  }
   0x1   :  { %2105 = sst [smem:[#allocation18_spill]] %s2098_s0 }
   0x2   :  { %2106 = sst [smem:[#allocation19_spill]] %s2100_s2 }
   0x3   :  { %2107 = sst [smem:[#allocation20_spill]] %s2101_s3 }
   0x4   :  { %10 = vsyncpa [#allocation4], 0 }
   0x5   :  { %12 = vsyncpa [#allocation4 + $0x1], 0 }
   0x6   :  { %13 = vsyncpa [#allocation7], 0 }
   0x7   :  { %15 = vsyncpa [#allocation7 + $0x1], 0 }
   0x8   :  { %16 = vsyncpa [#allocation10], 0 }
   0x9   :  { %17 = vsyncpa [#allocation5], 0 }
   0xa   :  { %19 = vsyncpa [#allocation5 + $0x1], 0  ;;  %s1670_s18 = smov 0   ;;  %s1672_s19 = smov 0  }
   0xb   :  { %s1674_s20 = smov 0   ;;  %s1676_s21 = smov 0  }
   0xc LB: > { %s1691_s22 = sadd.s32 4294967295, %s1628_s21   ;;  %s1236_s23 = sadd.s32 4294967294, %s1628_s21   ;;  %s1628_s21 = sphi %s1676_s21, %s2123_s21   ;;  %s1624_s20 = sphi %s1674_s20, %s2122_s20   ;;  %s1620_s19 = sphi %s1672_s19, %s2121_s19   ;;  %s1616_s18 = sphi %s1670_s18, %s2120_s18  }
   0xd   : > { %p45_p0 = scmp.ne.s32.totalorder %s1620_s19, %s1616_s18  ;;  %p46_p1 = scmp.eq.s32.totalorder %s1691_s22, 0 }
   0xe   : > { %p158_p2 = scmp.eq.s32.totalorder %s1691_s22, 1  ;;  %p164_p3 = scmp.eq.s32.totalorder %s1236_s23, 1 }
   0xf   : > { %p1700_p4 = por %p46_p1, %p45_p0  ;;  %p1237_p5 = scmp.ge.s32.totalorder %s1628_s21, 1 }
  0x10   : > { %p1705_p6 = por %p164_p3, %p45_p0  ;;  %p171_p7 = scmp.lt.s32.totalorder %s1628_s21, 3 }
  0x11   : > { %s2110_s2 = sld [smem:[#allocation19_spill]]  ;;  %s1630_s30 = smov [#allocation8]  }
  0x12   : > { %p1713_p8 = pnand %p1237_p5, %p171_p7  ;;  %s184_s6 = sshll.u32 %s1630_s30, 4  ;;  %s185_s6 = int_to_ptr.vmem [resolvable:$true] %s184_s6 }
  0x13   : > { %s2112_s3 = sld [smem:[#allocation20_spill]]  ;;  %s1631_s10 = smov 384  }
  0x14   : > { %p1315_p9 = pneg %p1713_p8  ;;  %s1632_s11 = smov 24  }
  0x15   : > { %s1633_s12 = smov [#allocation9]   ;;  %s1726_s14 = sadd.s32 1, %s1628_s21  }
  0x16   : > { %p1316_p10 = pnand %p1315_p9, %p46_p1  ;;  %s199_s13 = sshll.u32 %s1633_s12, 4  ;;  %s200_s13 = int_to_ptr.vmem [resolvable:$true] %s199_s13 }
  0x17   : > { %s182_s28 = sshll.u32 %s2110_s2, 4  ;;  %s32_s15 = sadd.s32 1, %s1624_s20  ;;  %s183_s28 = int_to_ptr.hbm [resolvable:$true] %s182_s28 }
  0x18   : > { %1318 = dma.hbm_to_vmem [thread:$0]  (!%p1316_p10), %s183_s28, 1536, %s185_s6, [#allocation7], %s1631_s10, %s1631_s10, %s1632_s11  }
  0x19   : > { %s197_s9 = sshll.u32 %s2112_s3, 4  ;;  %s29_s16 = ssub.s32 %s1628_s21, %s1726_s14  ;;  %s198_s9 = int_to_ptr.hbm [resolvable:$true] %s197_s9 }
  0x1a   : > { %1321 = dma.hbm_to_vmem [thread:$0]  (!%p1316_p10), %s198_s9, 48, %s200_s13, [#allocation10]  }
  0x1b   : > { %p39_p12 = scmp.ne.s32.totalorder %s1624_s20, %s1620_s19  ;;  %p30_p13 = scmp.eq.s32.totalorder %s29_s16, 0 }
  0x1c   : > { %p40_p0 = scmp.eq.s32.totalorder %s1628_s21, 0  ;;  %p1335_p5 = scmp.lt.s32.totalorder %s1628_s21, 2 }
  0x1d   : > { %p1736_p3 = por %p158_p2, %p39_p12  ;;  %s213_s26 = sand.u32 1, %s1624_s20  }
  0x1e   : > { %s1742_s23 = scalar_select %p30_p13, %s1624_s20, %s32_s15  }
  0x1f   : > { %p41_p7 = por %p40_p0, %p39_p12  ;;  %s1745_s27 = sshll.u32 %s213_s26, 5 }
  0x20   : > { %2114 = sst [smem:[#allocation17_spill]] %s1742_s23  ;;  %s2104_s28 = sshll.u32 %s1628_s21, 5 }
  0x21   : > { %s2115_s0 = sld [smem:[#allocation18_spill]]  ;;  %s217_s8 = scalar_lea.vmem [#allocation3], %s1745_s27 }
  0x22   : > { %s225_s9 = sshll.u32 %s217_s8, 4  ;;  %p1754_p2 = pnand %p1335_p5, %p41_p7  ;;  %s226_s9 = int_to_ptr.vmem [resolvable:$true] %s225_s9 }
  0x23   : > { %s214_s12 = scalar_lea.sflag [#allocation4], %s213_s26 }
  0x24   : > { %p1494_p10 = pneg %p1754_p2 }
  0x27   : > { %s222_s7 = scalar_lea.hbm %s2115_s0, %s2104_s28  ;;  %s1497_s6 = scalar_lea.hbm %s2115_s0, 64 }
  0x28   : > { %s223_s10 = sshll.u32 %s222_s7, 4  ;;  %s224_s10 = int_to_ptr.hbm [resolvable:$true] %s223_s10 }
  0x29   : > { %s1490_s13 = sshra.s32 %s224_s10, 4  ;;  %s1491_s13 = int_to_ptr.hbm [resolvable:$true] %s1490_s13 }
  0x2a   : > { %s1492_s15 = scalar_lea.hbm %s1491_s13, 32  ;;  %p1498_p0 = scmp.lt.s32.totalorder %s1491_s13, %s2115_s0 }
  0x2b   : > { %p1493_p9 = scmp.ne.s32.totalorder %s1491_s13, %s1492_s15  ;;  %p1499_p5 = scmp.lt.s32.totalorder %s1497_s6, %s1492_s15 }
  0x2d   : > { %p1495_p12 = pnand %p1494_p10, %p1493_p9  ;;  %p1500_p7 = por %p1499_p5, %p1498_p0 }
  0x2f   : > { %p1496_p13 = pneg %p1495_p12 }
  0x31   : > { %p1501_p11 = pnand %p1500_p7, %p1496_p13 }
  0x33   : > { %1504 = shalt.err (!%p1501_p11)
}
  0x34   : > { %s1634_s26 = smov 128   ;;  %s1635_s28 = smov 8  }
  0x35   : > { %1325 = dma.hbm_to_vmem [thread:$0]  (!%p1754_p2), %s224_s10, 512, %s226_s9, %s214_s12, %s1634_s26, %s1634_s26, %s1635_s28  }
  0x36   : > { %s2117_s2 = sshll.u32 %s1628_s21, 5  ;;  %s239_s7 = scalar_lea.vmem [#allocation6], %s1745_s27 }
  0x37   : > { %s244_s3 = scalar_lea.hbm %s2099_s1, %s2117_s2  ;;  %s247_s13 = sshll.u32 %s239_s7, 4  ;;  %s248_s13 = int_to_ptr.vmem [resolvable:$true] %s247_s13 }
  0x38   : > { %s245_s15 = sshll.u32 %s244_s3, 4  ;;  %s235_s6 = sand.u32 1, %s1628_s21   ;;  %s246_s15 = int_to_ptr.hbm [resolvable:$true] %s245_s15 }
  0x39   : > { %s236_s8 = scalar_lea.sflag [#allocation7], %s235_s6  ;;  %s1520_s0 = sshra.s32 %s246_s15, 4  ;;  %s1521_s0 = int_to_ptr.hbm [resolvable:$true] %s1520_s0 }
  0x3a   : > { %s1522_s23 = scalar_lea.hbm %s1521_s0, 32  ;;  %s1527_s12 = scalar_lea.hbm %s2099_s1, 64 }
  0x3b   : > { %p1523_p11 = scmp.ne.s32.totalorder %s1521_s0, %s1522_s23  ;;  %p1528_p13 = scmp.lt.s32.totalorder %s1521_s0, %s2099_s1 }
  0x3c   : > { %p1529_p0 = scmp.lt.s32.totalorder %s1527_s12, %s1522_s23 }
  0x3d   : > { %p1525_p9 = pnand %p1523_p11, %p1494_p10 }
  0x3e   : > { %p1530_p5 = por %p1529_p0, %p1528_p13 }
  0x3f   : > { %p1526_p12 = pneg %p1525_p9 }
  0x41   : > { %p1531_p7 = pnand %p1530_p5, %p1526_p12 }
  0x43   : > { %1534 = shalt.err (!%p1531_p7)
}
  0x44   : > { %1328 = dma.hbm_to_vmem [thread:$0]  (!%p1754_p2), %s246_s15, 512, %s248_s13, %s236_s8, %s1634_s26, %s1634_s26, %s1635_s28  }
  0x45   : > { %259 = sbr.rel (%p1713_p8) target bundleno = 1188 (0x4a4), region = 40  ;;  %s1792_s3 = sand.u32 (!%p1713_p8), 1, %s1620_s19  }
  0x46   : > { %s1795_s16 = sshll.u32 (!%p1713_p8), %s1792_s3, 5  ;;  %s262_s0 = scalar_lea.sflag (!%p1713_p8), [#allocation4], %s1792_s3 }
  0x47   : > { %s1799_s23 = scalar_lea.vmem (!%p1713_p8), [#allocation3], %s1795_s16 }
  0x4a   : > { %1595 = dma.done.wait (%p1700_p4), %s262_s0, 512  }
  0x4b   : > { %1597 = vsyncadd (%p1700_p4), %s262_s0, 4294966784  ;;  %s271_s29 = sand.u32 1, %s1691_s22   ;;  %s1807_s11 = scalar_lea.vmem [#allocation6], %s1795_s16 }
  0x4c   : > { %s272_s28 = scalar_lea.sflag [#allocation7], %s271_s29 }
  0x4d   : > { %1599 = dma.done.wait (%p1700_p4), %s272_s28, 512  }
  0x4e   : > { %1601 = vsyncadd (%p1700_p4), %s272_s28, 4294966784 }
  0x4f   : > { %1603 = dma.done.wait (%p46_p1), [#allocation7], 1536  }
  0x50   : > { %1605 = vsyncadd (%p46_p1), [#allocation7], 4294965760 }
  0x51   : > { %1607 = dma.done.wait (%p46_p1), [#allocation10], 48  }
  0x52   : > { %1609 = vsyncadd (%p46_p1), [#allocation10], 4294967248  ;;  %v335_v0 = vld [vmem:[#allocation8 + $0x50] sm:$0xff]  ;;  %v1821_v1 = vld [vmem:[#allocation8 + $0x48] sm:$0xff]  ;;  %vm350_vm0 = vcmask 261120   ;;  %vm466_vm1 = vcmask 130048  }
  0x53   : > { %v332_v2 = vld [vmem:[#allocation8 + $0x38] sm:$0xff]  ;;  %404 = vmatpush.msra.mxu1 %v335_v0  ;;  %375 = vmatpush.msra.mxu0 %v1821_v1  ;;  %v1824_v3 = vld [vmem:[#allocation8 + $0x30] sm:$0xff]  ;;  %v329_v4 = vld [vmem:[#allocation8 + $0x20] sm:$0xff]  ;;  %s1636_s24 = smov 64   ;;  %s1637_s7 = smov 96  }
  0x54   : > { %v1826_v5 = vld [vmem:[#allocation8 + $0x18] sm:$0xff]  ;;  %v326_v6 = vld [vmem:[#allocation8 + $0x8] sm:$0xff]  ;;  %v1829_v7 = vld [vmem:[#allocation8] sm:$0xff]  ;;  %s317_s13 = scalar_lea.vmem [#allocation11], %s1795_s16  ;;  %s1300_s15 = sshll.u32 %s1691_s22, 5 }
  0x55   : > { %405 = vmatpush.msra.mxu1 %v332_v2  ;;  %376 = vmatpush.msra.mxu0 %v1824_v3  ;;  %v336_v8 = vld [vmem:[#allocation8 + $0x58] sm:$0xff]  ;;  %v1833_v9 = vld [vmem:[%s1807_s11] sm:$0xff]  ;;  %v330_v11 = vld [vmem:[#allocation8 + $0x28] sm:$0xff]  ;;  %s1117_s9 = scalar_lea.hbm %s2103_s5, %s1300_s15  ;;  %s1118_s10 = sshll.u32 %s317_s13, 4  ;;  %s1119_s10 = int_to_ptr.vmem [resolvable:$true] %s1118_s10 }
  0x56   : > { %433 = vmatpush.msra.mxu2 %v336_v8  ;;  %v333_v10 = vld [vmem:[#allocation8 + $0x40] sm:$0xff]  ;;  %v327_v12 = vld [vmem:[#allocation8 + $0x10] sm:$0xff]  ;;  %v1841_v13 = vld [vmem:[%s1807_s11 + $0x8] sm:$0xff]  ;;  %s1120_s12 = sshll.u32 %s1117_s9, 4  ;;  %s1106_s22 = scalar_lea.sflag [#allocation5], %s1792_s3  ;;  %s1121_s12 = int_to_ptr.hbm [resolvable:$true] %s1120_s12 }
  0x57   : > { %406 = vmatpush.msra.mxu1 %v329_v4  ;;  %377 = vmatpush.msra.mxu0 %v1826_v5  ;;  %v1850_v14 = vld [vmem:[%s1807_s11 + $0x10] sm:$0xff]  ;;  %v1859_v15 = vld [vmem:[%s1807_s11 + $0x18] sm:$0xff]  ;;  %v337_v16 = vld [vmem:[#allocation9] sm:$0x7]  ;;  %s1564_s2 = sshra.s32 %s1121_s12, 4  ;;  %s1565_s2 = int_to_ptr.hbm [resolvable:$true] %s1564_s2 }
  0x58   : > { %434 = vmatpush.msra.mxu2 %v333_v10  ;;  %v1869_v17 = vperm.slane %v337_v16, 0  ;;  %v1871_v18 = vperm.slane %v337_v16, 1  ;;  %v1876_v23 = vld [vmem:[%s1799_s23] sm:$0xff]  ;;  %v1882_v28 = vperm.slane %v337_v16, 2  ;;  %v1885_v29 = vld [vmem:[%s1799_s23 + $0x8] sm:$0xff]  ;;  %v1894_v36 = vld [vmem:[%s1799_s23 + $0x10] sm:$0xff]  ;;  %p1571_p2 = scmp.lt.s32.totalorder %s1565_s2, %s2103_s5 }
  0x59   : > { %407 = vmatpush.msra.mxu1 %v326_v6  ;;  %378 = vmatpush.msra.mxu0 %v1829_v7  ;;  %v1903_v43 = vld [vmem:[%s1799_s23 + $0x18] sm:$0xff]  ;;  %v1918_v48 = vld [vmem:[%s2102_s4] ss:$0 sm:$0xff]  ;;  %s1566_s27 = scalar_lea.hbm %s1565_s2, 32  ;;  %s1570_s23 = scalar_lea.hbm %s2103_s5, 64 }
  0x5a   : > { %1257 = vmatmul.msk.f32.vlgmr.msra.gmra.mxu1 %vm350_vm0, %v1833_v9  ;;  %1253 = vmatmul.msk.f32.vlgmr.msra.gmra.mxu0 %vm350_vm0, %v1833_v9  ;;  %p1567_p1 = scmp.ne.s32.totalorder %s1565_s2, %s1566_s27  ;;  %p1572_p10 = scmp.lt.s32.totalorder %s1570_s23, %s1566_s27 }
  0x5b   : > { %787 = vmatpush.msrb.mxu0 %v335_v0  ;;  %816 = vmatpush.msrb.mxu1 %v336_v8 }
  0x5c   : > { %435 = vmatpush.msra.mxu2 %v330_v11  ;;  %p1568_p4 = pnand %p1567_p1, %p1736_p3  ;;  %p1573_p11 = por %p1572_p10, %p1571_p2 }
  0x5d   : > { %788 = vmatpush.msrb.mxu0 %v332_v2  ;;  %817 = vmatpush.msrb.mxu1 %v333_v10 }
  0x5e   : > { %436 = vmatpush.msra.mxu2 %v327_v12  ;;  %p1569_p8 = pneg %p1568_p4 }
  0x5f   : > { %789 = vmatpush.msrb.mxu0 %v329_v4  ;;  %1261 = vmatmul.msk.f32.vlgmr.msra.gmra.mxu2 %vm350_vm0, %v1833_v9 }
  0x60   : > { %818 = vmatpush.msrb.mxu1 %v330_v11  ;;  %p1574_p9 = pnand %p1573_p11, %p1569_p8 }
  0x61   : > { %790 = vmatpush.msrb.mxu0 %v326_v6 }
  0x62   : > { %1258 = vmatmul.msk.f32.gmra.mxu1 %vm350_vm0, %v1841_v13  ;;  %1254 = vmatmul.msk.f32.gmra.mxu0 %vm350_vm0, %v1841_v13 }
  0x63   : > { %819 = vmatpush.msrb.mxu1 %v327_v12 }
  0x67   : > { %1262 = vmatmul.msk.f32.gmra.mxu2 %vm350_vm0, %v1841_v13 }
  0x6a   : > { %1259 = vmatmul.msk.f32.gmra.mxu1 %vm350_vm0, %v1850_v14  ;;  %1255 = vmatmul.msk.f32.gmra.mxu0 %vm350_vm0, %v1850_v14 }
  0x6f   : > { %1263 = vmatmul.msk.f32.gmra.mxu2 %vm350_vm0, %v1850_v14 }
  0x72   : > { %1260 = vmatmul.msk.f32.gmra.mxu1 %vm350_vm0, %v1859_v15  ;;  %1256 = vmatmul.msk.f32.gmra.mxu0 %vm350_vm0, %v1859_v15 }
  0x77   : > { %1264 = vmatmul.msk.f32.gmra.mxu2 %vm350_vm0, %v1859_v15 }
  0xd7   : > { %v409_v19 = vpop.f32.mrf.mxu1  ;;  %v380_v20 = vpop.f32.mrf.mxu0 }
  0xd8   : > { %v381_v21 = vadd.f32 %v380_v20, %v1869_v17  ;;  %v410_v22 = vadd.f32 %v409_v19, %v1871_v18 }
  0xda   : > { %484 = vmatpush.msra.mxu3 %v410_v22 }
  0xdc   : > { %485 = vmatpush.msra.mxu3 %v381_v21 }
  0xdd   : > { %1265 = vmatmul.msk.f32.vlgmr.msra.gmra.mxu3 %vm466_vm1, %v1876_v23 }
  0xdf   : > { %v412_v24 = vpop.f32.mrf.mxu1  ;;  %v383_v25 = vpop.f32.mrf.mxu0 }
  0xe0   : > { %v413_v26 = vadd.f32 %v412_v24, %v1871_v18  ;;  %v384_v27 = vadd.f32 %v383_v25, %v1869_v17 }
  0xe2   : > { %507 = vmatpush.msrb.mxu3 %v413_v26  ;;  %v438_v30 = vpop.f32.mrf.mxu2 }
  0xe3   : > { %v439_v31 = vadd.f32 %v438_v30, %v1882_v28 }
  0xe4   : > { %508 = vmatpush.msrb.mxu3 %v384_v27 }
  0xe5   : > { %1266 = vmatmul.msk.f32.vlgmr.msrb.gmra.mxu3 %vm466_vm1, %v1885_v29  ;;  %650 = vrot.lane.b32.xlu0 %v439_v31, %s1636_s24 }
  0xe7   : > { %v415_v32 = vpop.f32.mrf.mxu1  ;;  %v386_v33 = vpop.f32.mrf.mxu0 }
  0xe8   : > { %v416_v34 = vadd.f32 %v415_v32, %v1871_v18  ;;  %v387_v35 = vadd.f32 %v386_v33, %v1869_v17 }
  0xea   : > { %530 = vmatpush.msra.mxu3 %v416_v34  ;;  %v441_v37 = vpop.f32.mrf.mxu2 }
  0xeb   : > { %v442_v38 = vadd.f32 %v441_v37, %v1882_v28 }
  0xec   : > { %531 = vmatpush.msra.mxu3 %v387_v35 }
  0xed   : > { %1267 = vmatmul.msk.f32.vlgmr.msra.gmra.mxu3 %vm466_vm1, %v1894_v36  ;;  %652 = vrot.lane.b32.xlu0 %v442_v38, %s1636_s24 }
  0xef   : > { %v418_v39 = vpop.f32.mrf.mxu1  ;;  %v389_v40 = vpop.f32.mrf.mxu0 }
  0xf0   : > { %v419_v41 = vadd.f32 %v418_v39, %v1871_v18  ;;  %v390_v42 = vadd.f32 %v389_v40, %v1869_v17 }
  0xf2   : > { %553 = vmatpush.msrb.mxu3 %v419_v41  ;;  %v444_v44 = vpop.f32.mrf.mxu2 }
  0xf3   : > { %v445_v45 = vadd.f32 %v444_v44, %v1882_v28 }
  0xf4   : > { %554 = vmatpush.msrb.mxu3 %v390_v42 }
  0xf5   : > { %1268 = vmatmul.msk.f32.vlgmr.msrb.gmra.mxu3 %vm466_vm1, %v1903_v43  ;;  %654 = vrot.lane.b32.xlu1 %v445_v45, %s1636_s24 }
  0xf6   : > { %758 = vmatpush.msra.mxu3 %v1821_v1 }
  0xf8   : > { %759 = vmatpush.msra.mxu3 %v1824_v3 }
  0xfa   : > { %760 = vmatpush.msra.mxu3 %v1826_v5  ;;  %v447_v46 = vpop.f32.mrf.mxu2 }
  0xfb   : > { %v448_v47 = vadd.f32 %v447_v46, %v1882_v28 }
  0xfc   : > { %761 = vmatpush.msra.mxu3 %v1829_v7 }
  0xfd   : > { %656 = vrot.lane.b32.xlu1 %v448_v47, %s1636_s24 }
 0x157   : > { %v651_v11 = vpop.permute.xlu0 %650 }
 0x15f   : > { %v653_v39 = vpop.permute.xlu0 %652 }
 0x160   : > { %v487_v49 = vpop.f32.mrf.mxu3 }
 0x161   : > { %v1921_v50 = vadd.f32 %v1918_v48, %v487_v49 }
 0x163   : > { %v566_v51 = vadd.f32 %v1921_v50, %v439_v31 }
 0x165   : > { %v1269_v52 = vmul.f32 -1.442695, %v566_v51 }
 0x167   : > { %1382 = vpow2.f32 %v1269_v52  ;;  %v655_v52 = vpop.permute.xlu1 %654 }
 0x168   : > { %v510_v53 = vpop.f32.mrf.mxu3 }
 0x169   : > { %v1925_v54 = vadd.f32 %v1918_v48, %v510_v53 }
 0x16b   : > { %v567_v55 = vadd.f32 %v1925_v54, %v442_v38 }
 0x16d   : > { %v1383_v56 = vpop.eup %1382  ;;  %v1270_v57 = vmul.f32 -1.442695, %v567_v55 }
 0x16e   : > { %v582_v58 = vadd.f32 1.0, %v1383_v56 }
 0x16f   : > { %1384 = vpow2.f32 %v1270_v57 }
 0x170   : > { %1386 = vrcp.f32 %v582_v58  ;;  %v533_v59 = vpop.f32.mrf.mxu3  ;;  %v597_v6 = vand.u32 2147483648, %v582_v58  ;;  %v595_v10 = vand.u32 2147483647, %v582_v58  ;;  %vm591_vm3 = vweird.f32 %v582_v58 }
 0x171   : > { %v1929_v60 = vadd.f32 %v1918_v48, %v533_v59 }
 0x172   : > { %v598_v22 = vor.u32 1.1754944e-38, %v597_v6  ;;  %vm596_vm5 = vcmp.eq.f32.partialorder %v595_v10, 8.507059e+37 }
 0x173   : > { %v568_v61 = vadd.f32 %v1929_v60, %v445_v45 }
 0x175   : > { %v1385_v62 = vpop.eup %1384  ;;  %v1271_v63 = vmul.f32 -1.442695, %v568_v61 }
 0x176   : > { %v1387_v0 = vpop.eup %1386  ;;  %v583_v1 = vadd.f32 1.0, %v1385_v62 }
 0x177   : > { %1388 = vpow2.f32 %v1271_v63  ;;  %v587_v2 = vmul.f32 %v1387_v0, %v582_v58  ;;  %vm592_vm2 = vweird.f32 %v1387_v0 }
 0x178   : > { %1390 = vrcp.f32 %v583_v1  ;;  %v556_v3 = vpop.f32.mrf.mxu3  ;;  %vm593_vm4 = vmor %vm591_vm3, %vm592_vm2  ;;  %v612_v31 = vand.u32 2147483648, %v583_v1  ;;  %v610_v33 = vand.u32 2147483647, %v583_v1  ;;  %vm606_vm7 = vweird.f32 %v583_v1 }
 0x179   : > { %v1933_v4 = vadd.f32 %v1918_v48, %v556_v3  ;;  %v588_v5 = vsub.f32 1.0, %v587_v2  ;;  %v657_v3 = vpop.permute.xlu1 %656 }
 0x17a   : > { %v613_v40 = vor.u32 1.1754944e-38, %v612_v31  ;;  %vm611_vm9 = vcmp.eq.f32.partialorder %v610_v33, 8.507059e+37 }
 0x17b   : > { %v569_v7 = vadd.f32 %v1933_v4, %v448_v47  ;;  %v589_v8 = vmul.f32 %v1387_v0, %v588_v5 }
 0x17d   : > { %v1389_v12 = vpop.eup %1388  ;;  %v1272_v16 = vmul.f32 -1.442695, %v569_v7  ;;  %v590_v19 = vadd.f32 %v1387_v0, %v589_v8 }
 0x17e   : > { %v1391_v20 = vpop.eup %1390  ;;  %v584_v21 = vadd.f32 1.0, %v1389_v12 }
 0x17f   : > { %1392 = vpow2.f32 %v1272_v16  ;;  %v594_v24 = vsel %vm593_vm4, %v1387_v0, %v590_v19  ;;  %v602_v25 = vmul.f32 %v1391_v20, %v583_v1  ;;  %vm607_vm6 = vweird.f32 %v1391_v20 }
 0x180   : > { %1394 = vrcp.f32 %v584_v21  ;;  %v599_v26 = vsel %vm596_vm5, %v598_v22, %v594_v24  ;;  %vm608_vm8 = vmor %vm606_vm7, %vm607_vm6  ;;  %v627_v47 = vand.u32 2147483648, %v584_v21  ;;  %v625_v51 = vand.u32 2147483647, %v584_v21 }
 0x181   : > { %v662_v27 = vmul.f32 %v651_v11, %v599_v26  ;;  %v603_v30 = vsub.f32 1.0, %v602_v25  ;;  %vm621_vm11 = vweird.f32 %v584_v21 }
 0x182   : > { %v628_v56 = vor.u32 1.1754944e-38, %v627_v47  ;;  %vm626_vm13 = vcmp.eq.f32.partialorder %v625_v51, 8.507059e+37 }
 0x183   : > { %670 = vrot.lane.b32.xlu2 %v662_v27, %s1636_s24  ;;  %v604_v32 = vmul.f32 %v1391_v20, %v603_v30 }
 0x185   : > { %v1393_v34 = vpop.eup %1392  ;;  %v605_v35 = vadd.f32 %v1391_v20, %v604_v32 }
 0x186   : > { %v1395_v37 = vpop.eup %1394  ;;  %v585_v38 = vadd.f32 1.0, %v1393_v34 }
 0x187   : > { %v609_v41 = vsel %vm608_vm8, %v1391_v20, %v605_v35  ;;  %v617_v42 = vmul.f32 %v1395_v37, %v584_v21  ;;  %vm622_vm10 = vweird.f32 %v1395_v37 }
 0x188   : > { %1396 = vrcp.f32 %v585_v38  ;;  %v614_v44 = vsel %vm611_vm9, %v613_v40, %v609_v41  ;;  %vm623_vm12 = vmor %vm621_vm11, %vm622_vm10  ;;  %v642_v63 = vand.u32 2147483648, %v585_v38  ;;  %v640_v1 = vand.u32 2147483647, %v585_v38 }
 0x189   : > { %v663_v45 = vmul.f32 %v653_v39, %v614_v44  ;;  %v618_v46 = vsub.f32 1.0, %v617_v42  ;;  %vm636_vm15 = vweird.f32 %v585_v38 }
 0x18a   : > { %v643_v5 = vor.u32 1.1754944e-38, %v642_v63  ;;  %vm641_vm3 = vcmp.eq.f32.partialorder %v640_v1, 8.507059e+37 }
 0x18b   : > { %672 = vrot.lane.b32.xlu2 %v663_v45, %s1636_s24  ;;  %v619_v49 = vmul.f32 %v1395_v37, %v618_v46 }
 0x18d   : > { %v620_v53 = vadd.f32 %v1395_v37, %v619_v49 }
 0x18e   : > { %v1397_v55 = vpop.eup %1396 }
 0x18f   : > { %v624_v57 = vsel %vm623_vm12, %v1395_v37, %v620_v53  ;;  %v632_v58 = vmul.f32 %v1397_v55, %v585_v38  ;;  %vm637_vm14 = vweird.f32 %v1397_v55 }
 0x190   : > { %v629_v59 = vsel %vm626_vm13, %v628_v56, %v624_v57  ;;  %vm638_vm2 = vmor %vm636_vm15, %vm637_vm14 }
 0x191   : > { %v664_v61 = vmul.f32 %v655_v52, %v629_v59  ;;  %v633_v62 = vsub.f32 1.0, %v632_v58 }
 0x193   : > { %674 = vrot.lane.b32.xlu0 %v664_v61, %s1636_s24  ;;  %v634_v0 = vmul.f32 %v1397_v55, %v633_v62 }
 0x195   : > { %v635_v2 = vadd.f32 %v1397_v55, %v634_v0 }
 0x197   : > { %v639_v6 = vsel %vm638_vm2, %v1397_v55, %v635_v2 }
 0x198   : > { %v644_v7 = vsel %vm641_vm3, %v643_v5, %v639_v6 }
 0x199   : > { %v665_v8 = vmul.f32 %v657_v3, %v644_v7 }
 0x19b   : > { %714 = vrot.lane.b32.xlu0 %v599_v26, %s1637_s7  ;;  %676 = vrot.lane.b32.xlu1 %v665_v8, %s1636_s24 }
 0x1dd   : > { %v671_v10 = vpop.permute.xlu2 %670 }
 0x1de   : > { %v682_v11 = vadd.f32 %v671_v10, %v1921_v50 }
 0x1e0   : > { %1398 = vtanh.f32 %v682_v11 }
 0x1e5   : > { %v673_v12 = vpop.permute.xlu2 %672 }
 0x1e6   : > { %v1399_v16 = vpop.eup %1398  ;;  %v683_v19 = vadd.f32 %v673_v12, %v1925_v54 }
 0x1e7   : > { %694 = vrot.lane.b32.xlu2 %v1399_v16, %s1636_s24 }
 0x1e8   : > { %1400 = vtanh.f32 %v683_v19 }
 0x1ee   : > { %v1401_v20 = vpop.eup %1400 }
 0x1ef   : > { %716 = vrot.lane.b32.xlu2 %v614_v44, %s1637_s7  ;;  %696 = vrot.lane.b32.xlu1 %v1401_v20, %s1636_s24 }
 0x1f7   : > { %718 = vrot.lane.b32.xlu1 %v629_v59, %s1637_s7 }
 0x205   : > { %v675_v21 = vpop.permute.xlu0 %674 }
 0x206   : > { %v684_v22 = vadd.f32 %v675_v21, %v1929_v60 }
 0x208   : > { %1402 = vtanh.f32 %v684_v22 }
 0x20d   : > { %v677_v50 = vpop.permute.xlu1 %676  ;;  %v715_v30 = vpop.permute.xlu0 %714 }
 0x20e   : > { %v1403_v24 = vpop.eup %1402  ;;  %v685_v25 = vadd.f32 %v677_v50, %v1933_v4 }
 0x20f   : > { %698 = vrot.lane.b32.xlu0 %v1403_v24, %s1636_s24 }
 0x210   : > { %1404 = vtanh.f32 %v685_v25 }
 0x216   : > { %v1405_v54 = vpop.eup %1404 }
 0x217   : > { %720 = vrot.lane.b32.xlu0 %v644_v7, %s1637_s7  ;;  %700 = vrot.lane.b32.xlu2 %v1405_v54, %s1636_s24 }
 0x241   : > { %v695_v26 = vpop.permute.xlu2 %694 }
 0x242   : > { %v706_v27 = vsub.f32 %v1833_v9, %v695_v26 }
 0x244   : > { %v726_v31 = vmul.f32 %v715_v30, %v706_v27 }
 0x246   : > { %v1953_v32 = vadd.f32 %v726_v31, %v695_v26 }
 0x248   : > { %1273 = vmatmul.msk.f32.vlgmr.msra.gmra.mxu3 %vm350_vm0, %v1953_v32  ;;  %1277 = vmatmul.msk.f32.vlgmr.msrb.gmra.mxu0 %vm350_vm0, %v1953_v32 }
 0x249   : > { %1281 = vmatmul.msk.f32.vlgmr.msrb.gmra.mxu1 %vm350_vm0, %v1953_v32  ;;  %v717_v33 = vpop.permute.xlu2 %716 }
 0x261   : > { %v697_v60 = vpop.permute.xlu1 %696 }
 0x262   : > { %v707_v4 = vsub.f32 %v1841_v13, %v697_v60 }
 0x264   : > { %v727_v34 = vmul.f32 %v717_v33, %v707_v4 }
 0x266   : > { %v1962_v35 = vadd.f32 %v727_v34, %v697_v60 }
 0x268   : > { %1274 = vmatmul.msk.f32.gmra.mxu3 %vm350_vm0, %v1962_v35  ;;  %1278 = vmatmul.msk.f32.gmra.mxu0 %vm350_vm0, %v1962_v35 }
 0x269   : > { %1282 = vmatmul.msk.f32.gmra.mxu1 %vm350_vm0, %v1962_v35  ;;  %v719_v38 = vpop.permute.xlu1 %718 }
 0x271   : > { %v701_v40 = vpop.permute.xlu2 %700 }
 0x272   : > { %v709_v41 = vsub.f32 %v1859_v15, %v701_v40 }
 0x281   : > { %v699_v9 = vpop.permute.xlu0 %698 }
 0x282   : > { %v708_v37 = vsub.f32 %v1850_v14, %v699_v9 }
 0x284   : > { %v728_v39 = vmul.f32 %v719_v38, %v708_v37 }
 0x286   : > { %v1971_v13 = vadd.f32 %v728_v39, %v699_v9 }
 0x288   : > { %1275 = vmatmul.msk.f32.gmra.mxu3 %vm350_vm0, %v1971_v13  ;;  %1279 = vmatmul.msk.f32.gmra.mxu0 %vm350_vm0, %v1971_v13 }
 0x289   : > { %1283 = vmatmul.msk.f32.gmra.mxu1 %vm350_vm0, %v1971_v13  ;;  %v721_v42 = vpop.permute.xlu0 %720 }
 0x28a   : > { %v729_v44 = vmul.f32 %v721_v42, %v709_v41 }
 0x28c   : > { %v1980_v45 = vadd.f32 %v729_v44, %v701_v40 }
 0x290   : > { %1276 = vmatmul.msk.f32.gmra.mxu3 %vm350_vm0, %v1980_v45  ;;  %1280 = vmatmul.msk.f32.gmra.mxu0 %vm350_vm0, %v1980_v45 }
 0x291   : > { %1284 = vmatmul.msk.f32.gmra.mxu1 %vm350_vm0, %v1980_v45 }
 0x2c5   : > { %v792_v14 = vpop.f32.mrf.mxu0 }
 0x2c6   : > { %v793_v15 = vadd.f32 %v792_v14, %v1871_v18  ;;  %v821_v46 = vpop.f32.mrf.mxu1 }
 0x2c7   : > { %v822_v47 = vadd.f32 %v821_v46, %v1882_v28 }
 0x2c8   : > { %863 = vmatpush.msrb.mxu2 %v793_v15 }
 0x2c9   : > { %1017 = vrot.lane.b32.xlu1 %v822_v47, %s1636_s24 }
 0x2cb   : > { %v763_v49 = vpop.f32.mrf.mxu3 }
 0x2cc   : > { %v764_v51 = vadd.f32 %v763_v49, %v1869_v17 }
 0x2ce   : > { %864 = vmatpush.msrb.mxu2 %v764_v51 }
 0x2cf   : > { %1285 = vmatmul.msk.f32.vlgmr.msrb.gmra.mxu2 %vm466_vm1, %v1876_v23 }
 0x2e5   : > { %v795_v52 = vpop.f32.mrf.mxu0 }
 0x2e6   : > { %v796_v53 = vadd.f32 %v795_v52, %v1871_v18  ;;  %v824_v55 = vpop.f32.mrf.mxu1 }
 0x2e7   : > { %v825_v56 = vadd.f32 %v824_v55, %v1882_v28 }
 0x2e8   : > { %883 = vmatpush.msra.mxu2 %v796_v53 }
 0x2e9   : > { %1019 = vrot.lane.b32.xlu2 %v825_v56, %s1636_s24 }
 0x2eb   : > { %v766_v57 = vpop.f32.mrf.mxu3 }
 0x2ec   : > { %v767_v58 = vadd.f32 %v766_v57, %v1869_v17 }
 0x2ee   : > { %884 = vmatpush.msra.mxu2 %v767_v58 }
 0x2ef   : > { %1286 = vmatmul.msk.f32.vlgmr.msra.gmra.mxu2 %vm466_vm1, %v1885_v29 }
 0x305   : > { %v798_v59 = vpop.f32.mrf.mxu0 }
 0x306   : > { %v799_v61 = vadd.f32 %v798_v59, %v1871_v18  ;;  %v827_v23 = vpop.f32.mrf.mxu1 }
 0x307   : > { %v2002_v62 = vadd.f32 %v827_v23, %v1882_v28 }
 0x308   : > { %903 = vmatpush.msrb.mxu2 %v799_v61 }
 0x309   : > { %1021 = vrot.lane.b32.xlu0 %v2002_v62, %s1636_s24 }
 0x30b   : > { %v769_v63 = vpop.f32.mrf.mxu3 }
 0x30c   : > { %v770_v0 = vadd.f32 %v769_v63, %v1869_v17 }
 0x30d   : > { %v801_v1 = vpop.f32.mrf.mxu0 }
 0x30e   : > { %v802_v2 = vadd.f32 %v801_v1, %v1871_v18  ;;  %v830_v3 = vpop.f32.mrf.mxu1  ;;  %904 = vmatpush.msrb.mxu2 %v770_v0 }
 0x30f   : > { %v2009_v29 = vadd.f32 %v830_v3, %v1882_v28  ;;  %1287 = vmatmul.msk.f32.vlgmr.msrb.gmra.mxu2 %vm466_vm1, %v1894_v36 }
 0x310   : > { %923 = vmatpush.msra.mxu2 %v802_v2 }
 0x311   : > { %1023 = vrot.lane.b32.xlu1 %v2009_v29, %s1636_s24 }
 0x313   : > { %v772_v5 = vpop.f32.mrf.mxu3 }
 0x314   : > { %v773_v6 = vadd.f32 %v772_v5, %v1869_v17 }
 0x316   : > { %924 = vmatpush.msra.mxu2 %v773_v6 }
 0x317   : > { %1288 = vmatmul.msk.f32.vlgmr.msra.gmra.mxu2 %vm466_vm1, %v1903_v43 }
 0x33b   : > { %v1018_v50 = vpop.permute.xlu1 %1017 }
 0x343   : > { %v1020_v42 = vpop.permute.xlu2 %1019 }
 0x352   : > { %v866_v18 = vpop.f32.mrf.mxu2 }
 0x353   : > { %v2019_v7 = vadd.f32 %v1918_v48, %v866_v18 }
 0x355   : > { %v933_v28 = vadd.f32 %v2019_v7, %v822_v47 }
 0x357   : > { %v1289_v8 = vmul.f32 -1.442695, %v933_v28 }
 0x359   : > { %1406 = vpow2.f32 %v1289_v8 }
 0x35f   : > { %v1407_v36 = vpop.eup %1406 }
 0x360   : > { %v949_v10 = vadd.f32 1.0, %v1407_v36 }
 0x362   : > { %1408 = vrcp.f32 %v949_v10  ;;  %v964_v19 = vand.u32 2147483648, %v949_v10  ;;  %v962_v20 = vand.u32 2147483647, %v949_v10  ;;  %vm958_vm1 = vweird.f32 %v949_v10 }
 0x364   : > { %v965_v43 = vor.u32 1.1754944e-38, %v964_v19  ;;  %vm963_vm6 = vcmp.eq.f32.partialorder %v962_v20, 8.507059e+37 }
 0x368   : > { %v1409_v11 = vpop.eup %1408 }
 0x369   : > { %v954_v12 = vmul.f32 %v1409_v11, %v949_v10  ;;  %vm959_vm4 = vweird.f32 %v1409_v11 }
 0x36a   : > { %vm960_vm5 = vmor %vm958_vm1, %vm959_vm4 }
 0x36b   : > { %v955_v16 = vsub.f32 1.0, %v954_v12 }
 0x36d   : > { %v956_v17 = vmul.f32 %v1409_v11, %v955_v16 }
 0x36f   : > { %v957_v21 = vadd.f32 %v1409_v11, %v956_v17 }
 0x371   : > { %v961_v22 = vsel %vm960_vm5, %v1409_v11, %v957_v21 }
 0x372   : > { %v886_v24 = vpop.f32.mrf.mxu2  ;;  %v2022_v25 = vsel %vm963_vm6, %v965_v43, %v961_v22 }
 0x373   : > { %v2025_v54 = vadd.f32 %v1918_v48, %v886_v24  ;;  %v1029_v26 = vmul.f32 %v1018_v50, %v2022_v25 }
 0x375   : > { %v934_v27 = vadd.f32 %v2025_v54, %v825_v56  ;;  %1037 = vrot.lane.b32.xlu2 %v1029_v26, %s1636_s24 }
 0x377   : > { %v1290_v30 = vmul.f32 -1.442695, %v934_v27 }
 0x379   : > { %1410 = vpow2.f32 %v1290_v30 }
 0x37b   : > { %v1022_v6 = vpop.permute.xlu0 %1021 }
 0x37f   : > { %v1411_v31 = vpop.eup %1410 }
 0x380   : > { %v950_v60 = vadd.f32 1.0, %v1411_v31 }
 0x382   : > { %1412 = vrcp.f32 %v950_v60  ;;  %v979_v9 = vand.u32 2147483648, %v950_v60  ;;  %v977_v38 = vand.u32 2147483647, %v950_v60  ;;  %vm973_vm8 = vweird.f32 %v950_v60 }
 0x383   : > { %v1024_v17 = vpop.permute.xlu1 %1023 }
 0x384   : > { %v980_v40 = vor.u32 1.1754944e-38, %v979_v9  ;;  %vm978_vm10 = vcmp.eq.f32.partialorder %v977_v38, 8.507059e+37 }
 0x388   : > { %v1413_v4 = vpop.eup %1412 }
 0x389   : > { %v969_v33 = vmul.f32 %v1413_v4, %v950_v60  ;;  %vm974_vm7 = vweird.f32 %v1413_v4 }
 0x38a   : > { %vm975_vm9 = vmor %vm973_vm8, %vm974_vm7 }
 0x38b   : > { %v970_v34 = vsub.f32 1.0, %v969_v33 }
 0x38d   : > { %v971_v37 = vmul.f32 %v1413_v4, %v970_v34 }
 0x38f   : > { %v972_v39 = vadd.f32 %v1413_v4, %v971_v37 }
 0x391   : > { %v976_v41 = vsel %vm975_vm9, %v1413_v4, %v972_v39 }
 0x392   : > { %v906_v44 = vpop.f32.mrf.mxu2  ;;  %v2030_v14 = vsel %vm978_vm10, %v980_v40, %v976_v41 }
 0x393   : > { %v2033_v15 = vadd.f32 %v1918_v48, %v906_v44  ;;  %v1030_v46 = vmul.f32 %v1020_v42, %v2030_v14 }
 0x395   : > { %v935_v47 = vadd.f32 %v2033_v15, %v2002_v62  ;;  %1039 = vrot.lane.b32.xlu0 %v1030_v46, %s1636_s24 }
 0x397   : > { %v1291_v49 = vmul.f32 -1.442695, %v935_v47 }
 0x399   : > { %1414 = vpow2.f32 %v1291_v49 }
 0x39a   : > { %v926_v51 = vpop.f32.mrf.mxu2 }
 0x39b   : > { %v932_v52 = vadd.f32 %v1918_v48, %v926_v51 }
 0x39d   : > { %v936_v53 = vadd.f32 %v932_v52, %v2009_v29 }
 0x39f   : > { %v1415_v55 = vpop.eup %1414  ;;  %v1292_v56 = vmul.f32 -1.442695, %v936_v53 }
 0x3a0   : > { %v951_v57 = vadd.f32 1.0, %v1415_v55 }
 0x3a1   : > { %1416 = vpow2.f32 %v1292_v56 }
 0x3a2   : > { %1418 = vrcp.f32 %v951_v57  ;;  %v994_v63 = vand.u32 2147483648, %v951_v57  ;;  %v992_v1 = vand.u32 2147483647, %v951_v57  ;;  %vm988_vm12 = vweird.f32 %v951_v57 }
 0x3a4   : > { %v995_v3 = vor.u32 1.1754944e-38, %v994_v63  ;;  %vm993_vm14 = vcmp.eq.f32.partialorder %v992_v1, 8.507059e+37 }
 0x3a7   : > { %v1417_v58 = vpop.eup %1416 }
 0x3a8   : > { %v1419_v59 = vpop.eup %1418  ;;  %v952_v61 = vadd.f32 1.0, %v1417_v58 }
 0x3a9   : > { %v984_v23 = vmul.f32 %v1419_v59, %v951_v57  ;;  %vm989_vm11 = vweird.f32 %v1419_v59 }
 0x3aa   : > { %1420 = vrcp.f32 %v952_v61  ;;  %vm990_vm13 = vmor %vm988_vm12, %vm989_vm11  ;;  %v1009_v36 = vand.u32 2147483648, %v952_v61  ;;  %v1007_v11 = vand.u32 2147483647, %v952_v61  ;;  %vm1003_vm2 = vweird.f32 %v952_v61 }
 0x3ab   : > { %v985_v62 = vsub.f32 1.0, %v984_v23 }
 0x3ac   : > { %v1010_v16 = vor.u32 1.1754944e-38, %v1009_v36  ;;  %vm1008_vm4 = vcmp.eq.f32.partialorder %v1007_v11, 8.507059e+37 }
 0x3ad   : > { %v986_v0 = vmul.f32 %v1419_v59, %v985_v62 }
 0x3af   : > { %v987_v2 = vadd.f32 %v1419_v59, %v986_v0 }
 0x3b0   : > { %v1421_v48 = vpop.eup %1420 }
 0x3b1   : > { %v991_v29 = vsel %vm990_vm13, %v1419_v59, %v987_v2  ;;  %v999_v5 = vmul.f32 %v1421_v48, %v952_v61  ;;  %vm1004_vm15 = vweird.f32 %v1421_v48 }
 0x3b2   : > { %v996_v18 = vsel %vm993_vm14, %v995_v3, %v991_v29  ;;  %vm1005_vm3 = vmor %vm1003_vm2, %vm1004_vm15 }
 0x3b3   : > { %v1031_v28 = vmul.f32 %v1022_v6, %v996_v18  ;;  %v1000_v8 = vsub.f32 1.0, %v999_v5 }
 0x3b5   : > { %1041 = vrot.lane.b32.xlu1 %v1031_v28, %s1636_s24  ;;  %v1001_v10 = vmul.f32 %v1421_v48, %v1000_v8 }
 0x3b7   : > { %v1002_v12 = vadd.f32 %v1421_v48, %v1001_v10 }
 0x3b9   : > { %v1006_v19 = vsel %vm1005_vm3, %v1421_v48, %v1002_v12 }
 0x3ba   : > { %v1011_v20 = vsel %vm1008_vm4, %v1010_v16, %v1006_v19 }
 0x3bb   : > { %v1032_v21 = vmul.f32 %v1024_v17, %v1011_v20 }
 0x3bd   : > { %1081 = vrot.lane.b32.xlu1 %v2022_v25, %s1637_s7  ;;  %1043 = vrot.lane.b32.xlu2 %v1032_v21, %s1636_s24 }
 0x3cf   : > { %v1038_v43 = vpop.permute.xlu2 %1037 }
 0x3d0   : > { %v1049_v22 = vadd.f32 %v1038_v43, %v2019_v7 }
 0x3d2   : > { %1422 = vtanh.f32 %v1049_v22 }
 0x3d8   : > { %v1423_v50 = vpop.eup %1422 }
 0x3d9   : > { %1061 = vrot.lane.b32.xlu0 %v1423_v50, %s1636_s24 }
 0x407   : > { %v1040_v24 = vpop.permute.xlu0 %1039 }
 0x408   : > { %v1050_v26 = vadd.f32 %v1040_v24, %v2025_v54 }
 0x40a   : > { %1424 = vtanh.f32 %v1050_v26 }
 0x410   : > { %v1425_v27 = vpop.eup %1424 }
 0x411   : > { %1063 = vrot.lane.b32.xlu1 %v1425_v27, %s1636_s24 }
 0x417   : > { %v1044_v30 = vpop.permute.xlu2 %1043 }
 0x418   : > { %v1052_v31 = vadd.f32 %v1044_v30, %v932_v52 }
 0x419   : > { %1087 = vrot.lane.b32.xlu1 %v1011_v20, %s1637_s7 }
 0x41a   : > { %1426 = vtanh.f32 %v1052_v31 }
 0x420   : > { %v1427_v25 = vpop.eup %1426 }
 0x421   : > { %1067 = vrot.lane.b32.xlu0 %v1427_v25, %s1636_s24 }
 0x427   : > { %v1042_v7 = vpop.permute.xlu1 %1041 }
 0x428   : > { %v1051_v60 = vadd.f32 %v1042_v7, %v2033_v15 }
 0x429   : > { %1085 = vrot.lane.b32.xlu0 %v996_v18, %s1637_s7 }
 0x42a   : > { %1428 = vtanh.f32 %v1051_v60 }
 0x42f   : > { %v1082_v34 = vpop.permute.xlu1 %1081 }
 0x430   : > { %v1429_v54 = vpop.eup %1428 }
 0x431   : > { %1065 = vrot.lane.b32.xlu2 %v1429_v54, %s1636_s24 }
 0x439   : > { %1083 = vrot.lane.b32.xlu2 %v2030_v14, %s1637_s7 }
 0x44b   : > { %v1062_v4 = vpop.permute.xlu0 %1061 }
 0x44c   : > { %v1073_v33 = vsub.f32 %v1953_v32, %v1062_v4 }
 0x44e   : > { %v1093_v9 = vmul.f32 %v1082_v34, %v1073_v33 }
 0x450   : > { %v1097_v37 = vadd.f32 %v1093_v9, %v1062_v4 }
 0x452   : > { %1101 = vst.msk [vmem:[%s317_s13] sm:$0xff] %vm350_vm0, %v1097_v37 }
 0x483   : > { %v1064_v38 = vpop.permute.xlu1 %1063 }
 0x484   : > { %v1074_v40 = vsub.f32 %v1962_v35, %v1064_v38 }
 0x48b   : > { %v1066_v39 = vpop.permute.xlu2 %1065  ;;  %v1088_v14 = vpop.permute.xlu1 %1087 }
 0x48c   : > { %v1075_v35 = vsub.f32 %v1971_v13, %v1066_v39 }
 0x493   : > { %v1068_v41 = vpop.permute.xlu0 %1067  ;;  %v1084_v42 = vpop.permute.xlu2 %1083 }
 0x494   : > { %v1076_v44 = vsub.f32 %v1980_v45, %v1068_v41  ;;  %v1094_v15 = vmul.f32 %v1084_v42, %v1074_v40 }
 0x496   : > { %v1096_v46 = vmul.f32 %v1088_v14, %v1076_v44  ;;  %v1098_v32 = vadd.f32 %v1094_v15, %v1064_v38 }
 0x498   : > { %v1100_v47 = vadd.f32 %v1096_v46, %v1068_v41  ;;  %1102 = vst.msk [vmem:[%s317_s13 + $0x8] sm:$0xff] %vm350_vm0, %v1098_v32 }
 0x49a   : > { %1104 = vst.msk [vmem:[%s317_s13 + $0x18] sm:$0xff] %vm350_vm0, %v1100_v47 }
 0x49b   : > { %v1086_v45 = vpop.permute.xlu0 %1085 }
 0x49c   : > { %v1095_v49 = vmul.f32 %v1086_v45, %v1075_v35 }
 0x49e   : > { %v1099_v51 = vadd.f32 %v1095_v49, %v1066_v39 }
 0x4a0   : > { %1103 = vst.msk [vmem:[%s317_s13 + $0x10] sm:$0xff] %vm350_vm0, %v1099_v51 }
 0x4a1   : > { %1577 = shalt.err (!%p1574_p9)
}
 0x4a2   : > { %s1638_s3 = smov 128   ;;  %s1639_s11 = smov 8  }
 0x4a3   : > { %1313 = dma.vmem_to_hbm [thread:$0]  (%p1736_p3), %s1119_s10, 512, %s1121_s12, %s1106_s22, %s1638_s3, %s1638_s3, %s1639_s11  }
 0x4a4 PF: > { %s1135_s24 = sand.u32 1, %s1616_s18   ;;  %p2118_p12 = scmp.ge.s32.totalorder %s1628_s21, 2 }
 0x4a5   : > { %s1136_s26 = scalar_lea.sflag [#allocation5], %s1135_s24 }
 0x4a6   : > { %p1330_p13 = pnand %p2118_p12, %p1705_p6 }
 0x4a8   : > { %p1331_p0 = pneg %p1330_p13 }
 0x4aa   : > { %1611 = dma.done.wait (%p1331_p0), %s1136_s26, 512  }
 0x4ab   : > { %1613 = vsyncadd (%p1331_p0), %s1136_s26, 4294966784  ;;  %s2119_s30 = sld [smem:[#allocation17_spill]]  ;;  %p22_p5 = scmp.ge.s32.totalorder %s1726_s14, 4  }
 0x4ac   : > { %s2120_s18 = smov %s1620_s19  ;;  %s2121_s19 = smov %s1624_s20 }
 0x4ad   : > { %s2123_s21 = smov %s1726_s14  ;;  %24 = sbr.rel (!%p22_p5) target bundleno = 12 (0xc), region = 106 }
 0x4b1   : > { %s2122_s20 = smov %s2119_s30 }
 0x4b2   :  { %1142 = vsyncpa [#allocation4], 1 }
 0x4b3   :  { %1144 = vsyncpa [#allocation4 + $0x1], 1 }
 0x4b4   :  { %1145 = vsyncpa [#allocation7], 1 }
 0x4b5   :  { %1147 = vsyncpa [#allocation7 + $0x1], 1 }
 0x4b6   :  { %1148 = vsyncpa [#allocation10], 1 }
 0x4b7   :  { %1149 = vsyncpa [#allocation5], 1 }
 0x4b8   :  { %1151 = vsyncpa [#allocation5 + $0x1], 1 }

</bundles_post_ra>
